<compile_context>
chip_gen: v7x
topology: tpu7x:2x2x1
jax: 0.10.0
libtpu: 0.0.40
codegen_flags: <defaults>
</compile_context>

<pallas_src>
import jax
import jax.numpy as jnp
from jax.experimental import pallas as pl
from jax.experimental.pallas import tpu as pltpu

# ---- small, TPU-friendly configuration consistent with the module ----
B = 2                       # batch
C1, C2, C3 = 8, 16, 32      # channel = [C1, C2, C3]
L1, L2, L3 = 128, 64, 32    # len     = [L1, L2, L3]
CC = 4                      # args.compress_c
EPS = 1e-5                  # BatchNorm eps

# Row offsets inside the 128-lane slab (PB_ROWS, L1). All starts 8-aligned.
PB_U2LW, PB_U4LW, PB_U2LB, PB_U4LB, PB_ROWS = 0, 64, 96, 104, 112
# Row offsets inside the 64-lane slab (PS_ROWS, PS_LANES). All starts 8-aligned.
PS_LANES = 64
PS_U4BD, PS_U2BD, PS_WLBD, PS_C3W, PS_WLSW = 0, 16, 32, 48, 56
PS_U4B, PS_U2B, PS_WLB, PS_WLSB, PS_C3B, PS_ROWS = 64, 80, 96, 112, 120, 128


def _dot(a, b):
    # DEFAULT precision: one bf16 MXU pass (f32 accumulate). The tolerance in
    # __main__ is sized for this; 'highest' (6 passes) is no longer forced.
    return jnp.dot(a, b, preferred_element_type=jnp.float32)


# ----------------------------- Pallas kernel -----------------------------
def asff3_kernel(x1_ref, x2_ref, x3_ref, pb_ref, ps_ref, out_ref):
    # ---- unpack packed parameters once (static, sublane-aligned row blocks) ----
    u2_lwT = pb_ref[PB_U2LW:PB_U2LW + L2, :]            # (L2, L1)
    u4_lwT = pb_ref[PB_U4LW:PB_U4LW + L3, :]            # (L3, L1)
    u2_lb = pb_ref[PB_U2LB:PB_U2LB + 1, :]              # (1, L1)
    u4_lb = pb_ref[PB_U4LB:PB_U4LB + 1, :]              # (1, L1)

    u4_bd = ps_ref[PS_U4BD:PS_U4BD + B * C1, 0:B * C3]  # (16, 64) batch block-diag
    u2_bd = ps_ref[PS_U2BD:PS_U2BD + B * C1, 0:B * C2]  # (16, 32)
    wl_bd = ps_ref[PS_WLBD:PS_WLBD + 3 * CC, 0:3 * C1]  # (12, 24) level block-diag
    c3_w = ps_ref[PS_C3W:PS_C3W + C1, 0:3 * C1]         # (8, 24)  [w0 | w1 | w2]
    wls_w = ps_ref[PS_WLSW:PS_WLSW + 3, 0:3 * CC]       # (3, 12)
    u4_b = ps_ref[PS_U4B:PS_U4B + B * C1, 0:1]          # (16, 1)  batch-repeated
    u2_b = ps_ref[PS_U2B:PS_U2B + B * C1, 0:1]          # (16, 1)
    wl_b = ps_ref[PS_WLB:PS_WLB + 3 * CC, 0:1]          # (12, 1)
    wls_b = ps_ref[PS_WLSB:PS_WLSB + 3, 0:1]            # (3, 1)
    c3_b = ps_ref[PS_C3B:PS_C3B + C1, 0:1]              # (8, 1)

    # --- Upsample2_0 / Upsample4_0, both batches in ONE matmul each.
    #     Batch is stacked on sublanes: inputs are (B*C, L), weights are
    #     batch-block-diagonal, so conv(+folded BN)->tanh->Linear need no loop. ---
    y2 = jnp.tanh(_dot(u2_bd, x2_ref[...]) + u2_b)       # (B*C1, L2)
    x2u_sb = _dot(y2, u2_lwT) + u2_lb                    # (B*C1, L1)
    y3 = jnp.tanh(_dot(u4_bd, x3_ref[...]) + u4_b)       # (B*C1, L3)
    x3u_sb = _dot(y3, u4_lwT) + u4_lb                    # (B*C1, L1)

    # --- switch batch from sublanes to lanes: (B*C1, L1) -> (C1, B*L1) = (8, 256)
    #     so every downstream matmul has N = 256 (fills the 2x256 MXU). ---
    def to_lane_batch(v):
        return jnp.concatenate([v[0:C1], v[C1:2 * C1]], axis=1)

    x1 = to_lane_batch(x1_ref[...])                      # (C1, B*L1)
    x2u = to_lane_batch(x2u_sb)
    x3u = to_lane_batch(x3u_sb)

    # --- level weights: one block-diagonal matmul + one logits matmul ---
    xs = jnp.concatenate([x1, x2u, x3u], axis=0)         # (3*C1, B*L1)
    wfeat = jnp.tanh(_dot(wl_bd, xs) + wl_b)             # (3*CC, B*L1)
    logits = _dot(wls_w, wfeat) + wls_b                  # (3, B*L1)

    # --- softmax over the 3 level rows (explicit rows; no cross-sublane reduce).
    #     Reciprocal on the EUP + one Newton step (restores ~f32 accuracy). ---
    l0, l1, l2 = logits[0:1, :], logits[1:2, :], logits[2:3, :]
    m = jnp.maximum(jnp.maximum(l0, l1), l2)
    e0, e1, e2 = jnp.exp(l0 - m), jnp.exp(l1 - m), jnp.exp(l2 - m)
    s = e0 + e1 + e2
    inv = pl.reciprocal(s, approx=True)
    inv = inv * (2.0 - s * inv)                          # Newton refinement
    fused = x1 * (e0 * inv) + x2u * (e1 * inv) + x3u * (e2 * inv)   # (C1, B*L1)

    # --- k=3, pad=1 conv (+folded BN) + tanh as ONE channel matmul over the
    #     concatenated taps. +/-1 taps via XLU lane rolls + boundary masks
    #     (the mask also zeroes the batch boundary at lane L1, so no cross-batch
    #     leakage from rolling the 256-wide lane-batched slab). ---
    col = jax.lax.broadcasted_iota(jnp.int32, fused.shape, 1)
    lane = col & (L1 - 1)                                # per-batch position
    x_prev = jnp.where(lane == 0, 0.0, pltpu.roll(fused, shift=1, axis=1))
    x_next = jnp.where(lane == L1 - 1, 0.0,
                       pltpu.roll(fused, shift=B * L1 - 1, axis=1))
    xcat = jnp.concatenate([x_prev, fused, x_next], axis=0)          # (3*C1, B*L1)
    out = jnp.tanh(_dot(c3_w, xcat) + c3_b)                          # (C1, B*L1)

    # back to (B*C1, L1) so the wrapper only reshapes (aligned 128-lane slices)
    out_ref[...] = jnp.concatenate([out[:, 0:L1], out[:, L1:2 * L1]], axis=0)


# ----------------------------- wrapper -----------------------------
def asff3_forward(x1, x2, x3, packed):
    # batch stacked on sublanes: (B, C, L) -> (B*C, L); pure reshape, no transpose
    x1_sb = x1.reshape(B * C1, L1)
    x2_sb = x2.reshape(B * C2, L2)
    x3_sb = x3.reshape(B * C3, L3)
    operands = (x1_sb, x2_sb, x3_sb, packed["pbig"], packed["psmall"])

    def vmem_spec(a):
        # whole array resident in VMEM; no grid (single kernel invocation)
        return pl.BlockSpec(a.shape, memory_space=pltpu.MemorySpace.VMEM)

    out = pl.pallas_call(
        asff3_kernel,
        out_shape=jax.ShapeDtypeStruct((B * C1, L1), jnp.float32),
        in_specs=[vmem_spec(a) for a in operands],
        out_specs=pl.BlockSpec((B * C1, L1), memory_space=pltpu.MemorySpace.VMEM),
    )(*operands)
    return out.reshape(B, C1, L1)


# ----------------------------- params (deterministic) -----------------------------
def _normal(key, shape, scale=0.1):
    return scale * jax.random.normal(key, shape, dtype=jnp.float32)


def _bn(key, c):
    k1, k2, k3, k4 = jax.random.split(key, 4)
    gamma = 1.0 + 0.1 * jax.random.normal(k1, (c,), jnp.float32)
    beta = 0.1 * jax.random.normal(k2, (c,), jnp.float32)
    mean = 0.1 * jax.random.normal(k3, (c,), jnp.float32)
    var = 1.0 + 0.1 * jax.random.uniform(k4, (c,), jnp.float32)
    return gamma, beta, mean, var


def _fold_1x1(w, bn):  # w: (Cout, Cin); eval-mode BN folded into conv
    gamma, beta, mean, var = bn
    s = gamma / jnp.sqrt(var + EPS)
    return w * s[:, None], (beta - mean * s)[:, None]


def init_params(key):
    ks = iter(jax.random.split(key, 24))
    p = {}

    # Upsample2_0: conv C2->C1 (k=1) + BN(C1), Linear L2->L1
    w, b = _fold_1x1(_normal(next(ks), (C1, C2)), _bn(next(ks), C1))
    lin_w = _normal(next(ks), (L1, L2))                 # torch Linear weight (out, in)
    lin_b = _normal(next(ks), (L1,))
    p["u2_w"], p["u2_b"], p["u2_lwT"], p["u2_lb"] = w, b, lin_w.T, lin_b[None, :]

    # Upsample4_0: conv C3->C1 (k=1) + BN(C1), Linear L3->L1
    w, b = _fold_1x1(_normal(next(ks), (C1, C3)), _bn(next(ks), C1))
    lin_w = _normal(next(ks), (L1, L3))
    lin_b = _normal(next(ks), (L1,))
    p["u4_w"], p["u4_b"], p["u4_lwT"], p["u4_lb"] = w, b, lin_w.T, lin_b[None, :]

    # weight_level_{1,2,3}: conv C1->CC (k=1) + BN(CC)
    for name in ("wl1", "wl2", "wl3"):
        w, b = _fold_1x1(_normal(next(ks), (CC, C1)), _bn(next(ks), CC))
        p[f"{name}_w"], p[f"{name}_b"] = w, b

    # weight_levels: Conv1d(3*CC -> 3, k=1, bias=True)
    wls_w = _normal(next(ks), (3, 3 * CC))
    wls_b = _normal(next(ks), (3,))
    p["wls_wa"] = wls_w[:, 0:CC]
    p["wls_wb"] = wls_w[:, CC:2 * CC]
    p["wls_wc"] = wls_w[:, 2 * CC:3 * CC]
    p["wls_b"] = wls_b[:, None]

    # final conv: Conv1d(C1 -> C1, k=3, pad=1, no bias) + BN(C1)
    c3_w = _normal(next(ks), (C1, C1, 3))
    gamma, beta, mean, var = _bn(next(ks), C1)
    s = gamma / jnp.sqrt(var + EPS)
    c3_w_eff = c3_w * s[:, None, None]
    p["c3_w0"], p["c3_w1"], p["c3_w2"] = c3_w_eff[:, :, 0], c3_w_eff[:, :, 1], c3_w_eff[:, :, 2]
    p["c3_b"] = (beta - mean * s)[:, None]
    return p


def pack_params(p):
    """Pack the 22 logical parameter tensors into 2 kernel operands (slabs)."""
    f32 = jnp.float32

    def bdiag2(w):  # batch block-diagonal (B=2): (O, I) -> (2O, 2I)
        o, i = w.shape
        z = jnp.zeros((o, i), f32)
        return jnp.concatenate([jnp.concatenate([w, z], axis=1),
                                jnp.concatenate([z, w], axis=1)], axis=0)

    # ---- 128-lane slab: Linear weights (transposed) + Linear biases ----
    pbig = jnp.zeros((PB_ROWS, L1), f32)
    pbig = pbig.at[PB_U2LW:PB_U2LW + L2].set(p["u2_lwT"])
    pbig = pbig.at[PB_U4LW:PB_U4LW + L3].set(p["u4_lwT"])
    pbig = pbig.at[PB_U2LB:PB_U2LB + 1].set(p["u2_lb"])
    pbig = pbig.at[PB_U4LB:PB_U4LB + 1].set(p["u4_lb"])

    # ---- 64-lane slab: small matmul weights + all column biases ----
    z = jnp.zeros((CC, C1), f32)
    wl_bd = jnp.concatenate([
        jnp.concatenate([p["wl1_w"], z, z], axis=1),
        jnp.concatenate([z, p["wl2_w"], z], axis=1),
        jnp.concatenate([z, z, p["wl3_w"]], axis=1)], axis=0)                 # (3*CC, 3*C1)
    c3_w = jnp.concatenate([p["c3_w0"], p["c3_w1"], p["c3_w2"]], axis=1)      # (C1, 3*C1)
    wls_w = jnp.concatenate([p["wls_wa"], p["wls_wb"], p["wls_wc"]], axis=1)  # (3, 3*CC)
    wl_b = jnp.concatenate([p["wl1_b"], p["wl2_b"], p["wl3_b"]], axis=0)      # (3*CC, 1)

    psmall = jnp.zeros((PS_ROWS, PS_LANES), f32)
    psmall = psmall.at[PS_U4BD:PS_U4BD + B * C1, 0:B * C3].set(bdiag2(p["u4_w"]))
    psmall = psmall.at[PS_U2BD:PS_U2BD + B * C1, 0:B * C2].set(bdiag2(p["u2_w"]))
    psmall = psmall.at[PS_WLBD:PS_WLBD + 3 * CC, 0:3 * C1].set(wl_bd)
    psmall = psmall.at[PS_C3W:PS_C3W + C1, 0:3 * C1].set(c3_w)
    psmall = psmall.at[PS_WLSW:PS_WLSW + 3, 0:3 * CC].set(wls_w)
    psmall = psmall.at[PS_U4B:PS_U4B + B * C1, 0:1].set(jnp.tile(p["u4_b"], (B, 1)))
    psmall = psmall.at[PS_U2B:PS_U2B + B * C1, 0:1].set(jnp.tile(p["u2_b"], (B, 1)))
    psmall = psmall.at[PS_WLB:PS_WLB + 3 * CC, 0:1].set(wl_b)
    psmall = psmall.at[PS_WLSB:PS_WLSB + 3, 0:1].set(p["wls_b"])
    psmall = psmall.at[PS_C3B:PS_C3B + C1, 0:1].set(p["c3_b"])

    return {"pbig": pbig, "psmall": psmall}


# ----------------------------- pure-JAX reference -----------------------------
def reference(x1, x2, x3, p):
    hp = jax.lax.Precision.HIGHEST  # accurate f32 baseline, no global config

    def conv1x1(w, b, x):  # w:(O,C), b:(O,1), x:(B,C,L)
        return jnp.einsum("oc,bcl->bol", w, x, precision=hp) + b[None]

    def up(x, w, b, lwT, lb):
        y = jnp.tanh(conv1x1(w, b, x))
        return jnp.einsum("bol,lm->bom", y, lwT, precision=hp) + lb[None]

    x2u = up(x2, p["u2_w"], p["u2_b"], p["u2_lwT"], p["u2_lb"])
    x3u = up(x3, p["u4_w"], p["u4_b"], p["u4_lwT"], p["u4_lb"])

    w1 = jnp.tanh(conv1x1(p["wl1_w"], p["wl1_b"], x1))
    w2 = jnp.tanh(conv1x1(p["wl2_w"], p["wl2_b"], x2u))
    w3 = jnp.tanh(conv1x1(p["wl3_w"], p["wl3_b"], x3u))

    logits = (jnp.einsum("oc,bcl->bol", p["wls_wa"], w1, precision=hp)
              + jnp.einsum("oc,bcl->bol", p["wls_wb"], w2, precision=hp)
              + jnp.einsum("oc,bcl->bol", p["wls_wc"], w3, precision=hp)
              + p["wls_b"][None])
    sm = jax.nn.softmax(logits, axis=1)

    fused = x1 * sm[:, 0:1, :] + x2u * sm[:, 1:2, :] + x3u * sm[:, 2:, :]

    pad = jnp.pad(fused, ((0, 0), (0, 0), (1, 1)))
    y = (jnp.einsum("oc,bcl->bol", p["c3_w0"], pad[:, :, :-2], precision=hp)
         + jnp.einsum("oc,bcl->bol", p["c3_w1"], pad[:, :, 1:-1], precision=hp)
         + jnp.einsum("oc,bcl->bol", p["c3_w2"], pad[:, :, 2:], precision=hp)
         + p["c3_b"][None])
    return jnp.tanh(y)


# ----------------------------- main -----------------------------
if __name__ == "__main__":
    key = jax.random.PRNGKey(0)
    k_in1, k_in2, k_in3, k_par = jax.random.split(key, 4)

    input1 = jax.random.normal(k_in1, (B, C1, L1), dtype=jnp.float32)
    input2 = jax.random.normal(k_in2, (B, C2, L2), dtype=jnp.float32)
    input3 = jax.random.normal(k_in3, (B, C3, L3), dtype=jnp.float32)
    params = init_params(k_par)
    packed = pack_params(params)

    out = jax.jit(asff3_forward)(input1, input2, input3, packed)
    out = jax.block_until_ready(out)

    ref = reference(input1, input2, input3, params)
    if out.shape != (B, C1, L1):
        raise AssertionError(f"bad output shape {out.shape}")
    # Tolerance sized for DEFAULT-precision (single bf16 MXU pass) in-kernel
    # matmuls compared against the f32/HIGHEST reference: outputs are tanh-bounded
    # in (-1, 1) and the expected worst-case deviation through the 4-matmul chain
    # is a few 1e-3; 2e-2 gives comfortable margin while still catching real bugs.
    if not jnp.allclose(out, ref, atol=2e-2, rtol=2e-2):
        err = float(jnp.max(jnp.abs(out - ref)))
        raise AssertionError(
            f"Pallas kernel output does not match JAX reference (max abs err {err:.3e})")

    print("KERNEL_OK")
</pallas_src>

<mosaic_0001>
module attributes {stable_mosaic.version = 11 : i64} {
  func.func @asff3_kernel(%arg0: memref<16x128xf32, #tpu.memory_space<vmem>>, %arg1: memref<32x64xf32, #tpu.memory_space<vmem>>, %arg2: memref<64x32xf32, #tpu.memory_space<vmem>>, %arg3: memref<112x128xf32, #tpu.memory_space<vmem>>, %arg4: memref<128x64xf32, #tpu.memory_space<vmem>>, %arg5: memref<16x128xf32, #tpu.memory_space<vmem>>) attributes {dimension_semantics = [], scalar_prefetch = 0 : i64, scratch_operands = 0 : i64, tpu.core_type = #tpu.core_type<tc>} {
    %c0 = arith.constant 0 : index
    %c0_0 = arith.constant 0 : index
    %0 = vector.load %arg3[%c0, %c0_0] : memref<112x128xf32, #tpu.memory_space<vmem>>, vector<64x128xf32>
    %c64 = arith.constant 64 : index
    %c0_1 = arith.constant 0 : index
    %1 = vector.load %arg3[%c64, %c0_1] : memref<112x128xf32, #tpu.memory_space<vmem>>, vector<32x128xf32>
    %c96 = arith.constant 96 : index
    %c0_2 = arith.constant 0 : index
    %2 = vector.load %arg3[%c96, %c0_2] : memref<112x128xf32, #tpu.memory_space<vmem>>, vector<1x128xf32>
    %c104 = arith.constant 104 : index
    %c0_3 = arith.constant 0 : index
    %3 = vector.load %arg3[%c104, %c0_3] : memref<112x128xf32, #tpu.memory_space<vmem>>, vector<1x128xf32>
    %c0_4 = arith.constant 0 : index
    %c0_5 = arith.constant 0 : index
    %4 = vector.load %arg4[%c0_4, %c0_5] : memref<128x64xf32, #tpu.memory_space<vmem>>, vector<16x64xf32>
    %c16 = arith.constant 16 : index
    %c0_6 = arith.constant 0 : index
    %5 = vector.load %arg4[%c16, %c0_6] : memref<128x64xf32, #tpu.memory_space<vmem>>, vector<16x32xf32>
    %c32 = arith.constant 32 : index
    %c0_7 = arith.constant 0 : index
    %6 = vector.load %arg4[%c32, %c0_7] : memref<128x64xf32, #tpu.memory_space<vmem>>, vector<12x24xf32>
    %c48 = arith.constant 48 : index
    %c0_8 = arith.constant 0 : index
    %7 = vector.load %arg4[%c48, %c0_8] : memref<128x64xf32, #tpu.memory_space<vmem>>, vector<8x24xf32>
    %c56 = arith.constant 56 : index
    %c0_9 = arith.constant 0 : index
    %8 = vector.load %arg4[%c56, %c0_9] : memref<128x64xf32, #tpu.memory_space<vmem>>, vector<3x12xf32>
    %c64_10 = arith.constant 64 : index
    %c0_11 = arith.constant 0 : index
    %9 = vector.load %arg4[%c64_10, %c0_11] : memref<128x64xf32, #tpu.memory_space<vmem>>, vector<16x1xf32>
    %c80 = arith.constant 80 : index
    %c0_12 = arith.constant 0 : index
    %10 = vector.load %arg4[%c80, %c0_12] : memref<128x64xf32, #tpu.memory_space<vmem>>, vector<16x1xf32>
    %c96_13 = arith.constant 96 : index
    %c0_14 = arith.constant 0 : index
    %11 = vector.load %arg4[%c96_13, %c0_14] : memref<128x64xf32, #tpu.memory_space<vmem>>, vector<12x1xf32>
    %c112 = arith.constant 112 : index
    %c0_15 = arith.constant 0 : index
    %12 = vector.load %arg4[%c112, %c0_15] : memref<128x64xf32, #tpu.memory_space<vmem>>, vector<3x1xf32>
    %c120 = arith.constant 120 : index
    %c0_16 = arith.constant 0 : index
    %13 = vector.load %arg4[%c120, %c0_16] : memref<128x64xf32, #tpu.memory_space<vmem>>, vector<8x1xf32>
    %c0_17 = arith.constant 0 : index
    %c0_18 = arith.constant 0 : index
    %14 = vector.load %arg1[%c0_17, %c0_18] : memref<32x64xf32, #tpu.memory_space<vmem>>, vector<32x64xf32>
    %cst = arith.constant dense<0.000000e+00> : vector<16x64xf32>
    %15 = tpu.matmul %5, %14, %cst {dimension_numbers = #tpu.dot_dimension_numbers<[1], [0], [0], [1], [0, 0, 1, 1], [], []>} : vector<16x32xf32>, vector<32x64xf32>, vector<16x64xf32> -> vector<16x64xf32>
    %16 = vector.broadcast %10 : vector<16x1xf32> to vector<16x64xf32>
    %17 = arith.addf %15, %16 : vector<16x64xf32>
    %18 = math.tanh %17 : vector<16x64xf32>
    %cst_19 = arith.constant dense<0.000000e+00> : vector<16x128xf32>
    %19 = tpu.matmul %18, %0, %cst_19 {dimension_numbers = #tpu.dot_dimension_numbers<[1], [0], [0], [1], [0, 0, 1, 1], [], []>} : vector<16x64xf32>, vector<64x128xf32>, vector<16x128xf32> -> vector<16x128xf32>
    %20 = vector.broadcast %2 : vector<1x128xf32> to vector<16x128xf32>
    %21 = arith.addf %19, %20 : vector<16x128xf32>
    %c0_20 = arith.constant 0 : index
    %c0_21 = arith.constant 0 : index
    %22 = vector.load %arg2[%c0_20, %c0_21] : memref<64x32xf32, #tpu.memory_space<vmem>>, vector<64x32xf32>
    %cst_22 = arith.constant dense<0.000000e+00> : vector<16x32xf32>
    %23 = tpu.matmul %4, %22, %cst_22 {dimension_numbers = #tpu.dot_dimension_numbers<[1], [0], [0], [1], [0, 0, 1, 1], [], []>} : vector<16x64xf32>, vector<64x32xf32>, vector<16x32xf32> -> vector<16x32xf32>
    %24 = vector.broadcast %9 : vector<16x1xf32> to vector<16x32xf32>
    %25 = arith.addf %23, %24 : vector<16x32xf32>
    %26 = math.tanh %25 : vector<16x32xf32>
    %cst_23 = arith.constant dense<0.000000e+00> : vector<16x128xf32>
    %27 = tpu.matmul %26, %1, %cst_23 {dimension_numbers = #tpu.dot_dimension_numbers<[1], [0], [0], [1], [0, 0, 1, 1], [], []>} : vector<16x32xf32>, vector<32x128xf32>, vector<16x128xf32> -> vector<16x128xf32>
    %28 = vector.broadcast %3 : vector<1x128xf32> to vector<16x128xf32>
    %29 = arith.addf %27, %28 : vector<16x128xf32>
    %c0_24 = arith.constant 0 : index
    %c0_25 = arith.constant 0 : index
    %30 = vector.load %arg0[%c0_24, %c0_25] : memref<16x128xf32, #tpu.memory_space<vmem>>, vector<16x128xf32>
    %31 = vector.extract_strided_slice %30 {offsets = [0, 0], sizes = [8, 128], strides = [1, 1]} : vector<16x128xf32> to vector<8x128xf32>
    %32 = vector.extract_strided_slice %30 {offsets = [8, 0], sizes = [8, 128], strides = [1, 1]} : vector<16x128xf32> to vector<8x128xf32>
    %33 = tpu.concatenate %31, %32 in 1 : vector<8x128xf32>, vector<8x128xf32> -> vector<8x256xf32>
    %34 = vector.extract_strided_slice %21 {offsets = [0, 0], sizes = [8, 128], strides = [1, 1]} : vector<16x128xf32> to vector<8x128xf32>
    %35 = vector.extract_strided_slice %21 {offsets = [8, 0], sizes = [8, 128], strides = [1, 1]} : vector<16x128xf32> to vector<8x128xf32>
    %36 = tpu.concatenate %34, %35 in 1 : vector<8x128xf32>, vector<8x128xf32> -> vector<8x256xf32>
    %37 = vector.extract_strided_slice %29 {offsets = [0, 0], sizes = [8, 128], strides = [1, 1]} : vector<16x128xf32> to vector<8x128xf32>
    %38 = vector.extract_strided_slice %29 {offsets = [8, 0], sizes = [8, 128], strides = [1, 1]} : vector<16x128xf32> to vector<8x128xf32>
    %39 = tpu.concatenate %37, %38 in 1 : vector<8x128xf32>, vector<8x128xf32> -> vector<8x256xf32>
    %40 = tpu.concatenate %33, %36, %39 in 0 : vector<8x256xf32>, vector<8x256xf32>, vector<8x256xf32> -> vector<24x256xf32>
    %cst_26 = arith.constant dense<0.000000e+00> : vector<12x256xf32>
    %41 = tpu.matmul %6, %40, %cst_26 {dimension_numbers = #tpu.dot_dimension_numbers<[1], [0], [0], [1], [0, 0, 1, 1], [], []>} : vector<12x24xf32>, vector<24x256xf32>, vector<12x256xf32> -> vector<12x256xf32>
    %42 = vector.broadcast %11 : vector<12x1xf32> to vector<12x256xf32>
    %43 = arith.addf %41, %42 : vector<12x256xf32>
    %44 = math.tanh %43 : vector<12x256xf32>
    %cst_27 = arith.constant dense<0.000000e+00> : vector<3x256xf32>
    %45 = tpu.matmul %8, %44, %cst_27 {dimension_numbers = #tpu.dot_dimension_numbers<[1], [0], [0], [1], [0, 0, 1, 1], [], []>} : vector<3x12xf32>, vector<12x256xf32>, vector<3x256xf32> -> vector<3x256xf32>
    %46 = vector.broadcast %12 : vector<3x1xf32> to vector<3x256xf32>
    %47 = arith.addf %45, %46 : vector<3x256xf32>
    %48 = vector.extract_strided_slice %47 {offsets = [0, 0], sizes = [1, 256], strides = [1, 1]} : vector<3x256xf32> to vector<1x256xf32>
    %49 = vector.extract_strided_slice %47 {offsets = [1, 0], sizes = [1, 256], strides = [1, 1]} : vector<3x256xf32> to vector<1x256xf32>
    %50 = vector.extract_strided_slice %47 {offsets = [2, 0], sizes = [1, 256], strides = [1, 1]} : vector<3x256xf32> to vector<1x256xf32>
    %51 = arith.maximumf %48, %49 : vector<1x256xf32>
    %52 = arith.maximumf %51, %50 : vector<1x256xf32>
    %53 = arith.subf %48, %52 : vector<1x256xf32>
    %54 = math.exp %53 : vector<1x256xf32>
    %55 = arith.subf %49, %52 : vector<1x256xf32>
    %56 = math.exp %55 : vector<1x256xf32>
    %57 = arith.subf %50, %52 : vector<1x256xf32>
    %58 = math.exp %57 : vector<1x256xf32>
    %59 = arith.addf %54, %56 : vector<1x256xf32>
    %60 = arith.addf %59, %58 : vector<1x256xf32>
    %61 = tpu.reciprocal %60 {approx = true} : vector<1x256xf32> -> vector<1x256xf32>
    %62 = arith.mulf %60, %61 : vector<1x256xf32>
    %cst_28 = arith.constant 2.000000e+00 : f32
    %63 = vector.broadcast %cst_28 : f32 to vector<1x256xf32>
    %64 = arith.subf %63, %62 : vector<1x256xf32>
    %65 = arith.mulf %61, %64 : vector<1x256xf32>
    %66 = arith.mulf %54, %65 : vector<1x256xf32>
    %67 = vector.broadcast %66 : vector<1x256xf32> to vector<8x256xf32>
    %68 = arith.mulf %33, %67 : vector<8x256xf32>
    %69 = arith.mulf %56, %65 : vector<1x256xf32>
    %70 = vector.broadcast %69 : vector<1x256xf32> to vector<8x256xf32>
    %71 = arith.mulf %36, %70 : vector<8x256xf32>
    %72 = arith.addf %68, %71 : vector<8x256xf32>
    %73 = arith.mulf %58, %65 : vector<1x256xf32>
    %74 = vector.broadcast %73 : vector<1x256xf32> to vector<8x256xf32>
    %75 = arith.mulf %39, %74 : vector<8x256xf32>
    %76 = arith.addf %72, %75 : vector<8x256xf32>
    %77 = tpu.iota {dimensions = array<i32: 1>} : vector<8x256xi32>
    %c127_i32 = arith.constant 127 : i32
    %78 = vector.broadcast %c127_i32 : i32 to vector<8x256xi32>
    %79 = arith.andi %77, %78 : vector<8x256xi32>
    %c0_i32 = arith.constant 0 : i32
    %80 = vector.broadcast %c0_i32 : i32 to vector<8x256xi32>
    %81 = arith.cmpi eq, %79, %80 : vector<8x256xi32>
    %c1_i32 = arith.constant 1 : i32
    %82 = tpu.dynamic_rotate %76 by %c1_i32 dim 1 : vector<8x256xf32>, i32 -> vector<8x256xf32>
    %cst_29 = arith.constant 0.000000e+00 : f32
    %83 = vector.broadcast %cst_29 : f32 to vector<8x256xf32>
    %84 = arith.select %81, %83, %82 : vector<8x256xi1>, vector<8x256xf32>
    %c127_i32_30 = arith.constant 127 : i32
    %85 = vector.broadcast %c127_i32_30 : i32 to vector<8x256xi32>
    %86 = arith.cmpi eq, %79, %85 : vector<8x256xi32>
    %c255_i32 = arith.constant 255 : i32
    %87 = tpu.dynamic_rotate %76 by %c255_i32 dim 1 : vector<8x256xf32>, i32 -> vector<8x256xf32>
    %cst_31 = arith.constant 0.000000e+00 : f32
    %88 = vector.broadcast %cst_31 : f32 to vector<8x256xf32>
    %89 = arith.select %86, %88, %87 : vector<8x256xi1>, vector<8x256xf32>
    %90 = tpu.concatenate %84, %76, %89 in 0 : vector<8x256xf32>, vector<8x256xf32>, vector<8x256xf32> -> vector<24x256xf32>
    %cst_32 = arith.constant dense<0.000000e+00> : vector<8x256xf32>
    %91 = tpu.matmul %7, %90, %cst_32 {dimension_numbers = #tpu.dot_dimension_numbers<[1], [0], [0], [1], [0, 0, 1, 1], [], []>} : vector<8x24xf32>, vector<24x256xf32>, vector<8x256xf32> -> vector<8x256xf32>
    %92 = vector.broadcast %13 : vector<8x1xf32> to vector<8x256xf32>
    %93 = arith.addf %91, %92 : vector<8x256xf32>
    %94 = math.tanh %93 : vector<8x256xf32>
    %95 = vector.extract_strided_slice %94 {offsets = [0, 0], sizes = [8, 128], strides = [1, 1]} : vector<8x256xf32> to vector<8x128xf32>
    %96 = vector.extract_strided_slice %94 {offsets = [0, 128], sizes = [8, 128], strides = [1, 1]} : vector<8x256xf32> to vector<8x128xf32>
    %97 = tpu.concatenate %95, %96 in 0 : vector<8x128xf32>, vector<8x128xf32> -> vector<16x128xf32>
    %c0_33 = arith.constant 0 : index
    %c0_34 = arith.constant 0 : index
    %98 = vector.load %arg5[%c0_33, %c0_34] : memref<16x128xf32, #tpu.memory_space<vmem>>, vector<16x128xf32>
    tpu.vector_store %arg5[%c0_33, %c0_34], %97 {strides = array<i32>} : memref<16x128xf32, #tpu.memory_space<vmem>>, vector<16x128xf32>,
    return
  }
}

</mosaic_0001>

<bundles_post_ra>
// kernel: asff3_forward.1
= control target key start
LH: loop header
LB: loop body
LE: loop exit
PB: predicated region body
PF: predicated region fallthrough
CT: control target
= control target key end

     0   :  { %10 = vsyncpa [#allocation3], 0  ;;  %s1382_s0 = inlined_call_operand.hbm [shape: f32[16,128], index: 0, kind: input, shape index: {}]   ;;  %s1383_s1 = inlined_call_operand.vmem [shape: f32[32,64], index: 1, kind: input, shape index: {}]   ;;  %s1384_s2 = inlined_call_operand.vmem [shape: f32[64,32], index: 2, kind: input, shape index: {}]   ;;  %s1385_s3 = inlined_call_operand.vmem [shape: f32[112,128], index: 3, kind: input, shape index: {}]   ;;  %s1386_s4 = inlined_call_operand.vmem [shape: f32[128,64], index: 4, kind: input, shape index: {}]   ;;  %s1387_s5 = inlined_call_operand.hbm [shape: f32[16,128], index: 5, kind: output, shape index: {}]  }
   0x1   :  { %11 = vsyncpa [#allocation4], 0  ;;  %s1149_s18 = smov [#allocation2]   ;;  %s1101_s22 = scalar_lea.hbm %s1382_s0, 256 }
   0x2   :  { %s17_s19 = sshll.u32 %s1149_s18, 4  ;;  %p1102_p0 = scmp.ne.s32.totalorder %s1382_s0, %s1101_s22  ;;  %s18_s19 = int_to_ptr.vmem [resolvable:$true] %s17_s19 }
   0x3   :  { %p1105_p1 = scmp.lt.u32.totalorder %s1101_s22, %s1382_s0 }
   0x5   :  { %p1107_p2 = pnand %p1105_p1, %p1102_p0 }
   0x7   :  { %1110 = shalt.err (!%p1107_p2)
}
   0x8   :  { %s1111_s27 = scalar_lea.vmem %s18_s19, 256  ;;  %p1116_p4 = scmp.lt.s32.totalorder %s18_s19, %s18_s19 }
   0x9   :  { %p1112_p3 = scmp.ne.s32.totalorder %s18_s19, %s1111_s27  ;;  %p1117_p5 = scmp.lt.s32.totalorder %s1111_s27, %s1111_s27 }
   0xb   :  { %p1118_p6 = por %p1117_p5, %p1116_p4 }
   0xd   :  { %p1119_p7 = pnand %p1118_p6, %p1112_p3 }
   0xf   :  { %1122 = shalt.err (!%p1119_p7)
}
  0x10   :  { %s1150_s28 = smov 128   ;;  %s1151_s29 = smov 8  }
  0x11   :  { %23 = dma.hbm_to_vmem [thread:$0]  %s1382_s0, 256, %s18_s19, [#allocation3], %s1150_s28, %s1150_s28, %s1151_s29  }
  0x12   :  { %1145 = dma.done.wait [#allocation3], 256  }
  0x13   :  { %1146 = vsyncadd [#allocation3], 4294967040  ;;  %v1152_v0 = vmov 0   ;;  %vm79_vm0 = vcmask 261120   ;;  %v65_v1 = vld [vmem:[%s1383_s1] sm:$0xff]  ;;  %v66_v2 = vld [vmem:[%s1383_s1 + $0x8] sm:$0xff] }
  0x14   :  { %1058 = vset.pattern.permute.xlu0 %v1152_v0  ;;  %1059 = vset.pattern.permute.xlu1 %v1152_v0  ;;  %v67_v3 = vld [vmem:[%s1383_s1 + $0x10] sm:$0xff]  ;;  %v985_v4 = vpack.c.bf16 %v66_v2, %v65_v1  ;;  %v68_v5 = vld [vmem:[%s1383_s1 + $0x18] sm:$0xff]  ;;  %v249_v8 = vld [vmem:[%s1384_s2] sm:$0xff]  ;;  %vm167_vm1 = vcmask 523264   ;;  %v1153_v0 = vmov 0.0   ;;  %vm447_vm2 = vcmask 195584  }
  0x15   :  { %v51_v6 = vld [vmem:[%s1386_s4 + $0x10] sm:$0xff]  ;;  %v989_v7 = vpack.c.bf16 %v68_v5, %v67_v3  ;;  %v250_v9 = vld [vmem:[%s1384_s2 + $0x8] sm:$0xff]  ;;  %v252_v13 = vld [vmem:[%s1384_s2 + $0x18] sm:$0xff]  ;;  %vm544_vm3 = vcmask 1043456   ;;  %vm1154_vm4 = vmmov 1   ;;  %vm540_vm6 = vcmask 97280  }
  0x16   :  { %933 = vmatprep.mubr.msk.f32.mxu0 %vm79_vm0, %v51_v6  ;;  %986 = vmatprep.subr.bf16.mxu0 %v985_v4  ;;  %v1009_v10 = vpack.c.bf16 %v250_v9, %v249_v8  ;;  %v59_v11 = vld [vmem:[%s1386_s4 + $0x50] sm:$0xff]  ;;  %v57_v14 = vld [vmem:[%s1386_s4 + $0x40] sm:$0xff]  ;;  %v60_v15 = vld [vmem:[%s1386_s4 + $0x58] sm:$0xff]  ;;  %s1155_s9 = smov 127   ;;  %s1156_s12 = smov 1  }
  0x17   :  { %988 = vmatpush3.bf16.msra.mxu0 %v985_v4  ;;  %v251_v12 = vld [vmem:[%s1384_s2 + $0x10] sm:$0xff]  ;;  %71 = vperm.xlu0 %1058, %v59_v11   ;;  %v52_v16 = vld [vmem:[%s1386_s4 + $0x18] sm:$0xff]  ;;  %v58_v17 = vld [vmem:[%s1386_s4 + $0x48] sm:$0xff]  ;;  %s1157_s14 = smov [#allocation5]  }
  0x18   :  { %990 = vmatprep.subr.bf16.mxu0 %v989_v7  ;;  %259 = vperm.xlu1 %1059, %v57_v14   ;;  %v1013_v18 = vpack.c.bf16 %v252_v13, %v251_v12  ;;  %v49_v19 = vld [vmem:[%s1386_s4] sm:$0xff]  ;;  %v254_v21 = vld [vmem:[%s1384_s2 + $0x28] sm:$0xff]  ;;  %v255_v25 = vld [vmem:[%s1384_s2 + $0x30] sm:$0xff]  ;;  %s853_s15 = sshll.u32 %s1157_s14, 4  ;;  %s854_s15 = int_to_ptr.vmem [resolvable:$true] %s853_s15 }
  0x19   :  { %v253_v20 = vld [vmem:[%s1384_s2 + $0x20] sm:$0xff]  ;;  %v62_v23 = vld [vmem:[%s1386_s4 + $0x68] sm:$0xf]  ;;  %v256_v26 = vld [vmem:[%s1384_s2 + $0x38] sm:$0xff]  ;;  %s1123_s16 = scalar_lea.vmem %s854_s15, 256  ;;  %p1128_p9 = scmp.lt.s32.totalorder %s854_s15, %s854_s15 }
  0x1a   :  { %v61_v22 = vld [vmem:[%s1386_s4 + $0x60] sm:$0xff]  ;;  %v1017_v24 = vpack.c.bf16 %v254_v21, %v253_v20  ;;  %v63_v27 = vld [vmem:[%s1386_s4 + $0x70] sm:$0x7]  ;;  %v1021_v28 = vpack.c.bf16 %v256_v26, %v255_v25  ;;  %v50_v29 = vld [vmem:[%s1386_s4 + $0x8] sm:$0xff]  ;;  %p1124_p8 = scmp.ne.s32.totalorder %s854_s15, %s1123_s16  ;;  %p1129_p10 = scmp.lt.s32.totalorder %s1123_s16, %s1123_s16 }
  0x1b   :  { %992 = vmatpush3.bf16.msra.mxu0 %v989_v7  ;;  %76 = vperm.xlu0 %1058, %v60_v15   ;;  %v35_v30 = vld [vmem:[%s1385_s3] sm:$0xff]  ;;  %v36_v31 = vld [vmem:[%s1385_s3 + $0x8] sm:$0xff]  ;;  %v37_v33 = vld [vmem:[%s1385_s3 + $0x10] sm:$0xff] }
  0x1c   :  { %1010 = vmatprep.subr.bf16.mxu0 %v1009_v10  ;;  %264 = vperm.xlu1 %1059, %v58_v17   ;;  %v993_v32 = vpack.c.bf16 %v36_v31, %v35_v30  ;;  %v38_v34 = vld [vmem:[%s1385_s3 + $0x18] sm:$0xff]  ;;  %v39_v36 = vld [vmem:[%s1385_s3 + $0x20] sm:$0xff]  ;;  %v40_v37 = vld [vmem:[%s1385_s3 + $0x28] sm:$0xff]  ;;  %p1130_p11 = por %p1129_p10, %p1128_p9 }
  0x1d   :  { %v997_v35 = vpack.c.bf16 %v38_v34, %v37_v33  ;;  %v41_v38 = vld [vmem:[%s1385_s3 + $0x30] sm:$0xff]  ;;  %v1001_v39 = vpack.c.bf16 %v40_v37, %v39_v36  ;;  %v42_v40 = vld [vmem:[%s1385_s3 + $0x38] sm:$0xff]  ;;  %v43_v42 = vld [vmem:[%s1385_s3 + $0x40] sm:$0xff] }
  0x1e   :  { %934 = vmatmul.mubr.msk.f32.vlgmr.msra.gmra.mrb[0].mxu0 %vm79_vm0, %v52_v16  ;;  %994 = vmatprep.subr.bf16.mxu1 %v993_v32  ;;  %v1005_v41 = vpack.c.bf16 %v42_v40, %v41_v38  ;;  %v44_v43 = vld [vmem:[%s1385_s3 + $0x48] sm:$0xff]  ;;  %v45_v52 = vld [vmem:[%s1385_s3 + $0x50] sm:$0xff]  ;;  %v46_v53 = vld [vmem:[%s1385_s3 + $0x58] sm:$0xff]  ;;  %p1131_p12 = pnand %p1130_p11, %p1124_p8 }
  0x1f   :  { %1012 = vmatpush3.bf16.msra.mxu0 %v1009_v10  ;;  %971 = vmatprep.mubr.msk.f32.mxu0 %vm167_vm1, %v49_v19  ;;  %v1025_v44 = vpack.c.bf16 %v44_v43, %v43_v42  ;;  %v1029_v56 = vpack.c.bf16 %v46_v53, %v45_v52  ;;  %v867_v1 = vld [vmem:[%s1385_s3 + $0x60] ss:$0 sm:$0xff]  ;;  %v1319_v3 = vld [vmem:[#allocation2 + $0x8] sm:$0xff]  ;;  %vm1038_vm5 = vmpackc.low %vm544_vm3, %vm1154_vm4 }
  0x20   :  { %1014 = vmatprep.subr.bf16.mxu0 %v1013_v18  ;;  %439 = vperm.xlu0 %1058, %v61_v22   ;;  %v1323_v6 = vld [vmem:[#allocation2] sm:$0xff]  ;;  %v872_v10 = vld [vmem:[%s1385_s3 + $0x68] ss:$0 sm:$0xff]  ;;  %v56_v33 = vld [vmem:[%s1386_s4 + $0x38] sm:$0x7] }
  0x21   :  { %444 = vperm.xlu1 %1059, %v62_v23   ;;  %996 = vmatpush3.bf16.msra.mxu1 %v993_v32  ;;  %v53_v15 = vld [vmem:[%s1386_s4 + $0x20] sm:$0xff]  ;;  %v54_v16 = vld [vmem:[%s1386_s4 + $0x28] sm:$0xf] }
  0x22   :  { %998 = vmatprep.subr.bf16.mxu1 %v997_v35 }
  0x23   :  { %1016 = vmatpush3.bf16.msra.mxu0 %v1013_v18 }
  0x24   :  { %1018 = vmatprep.subr.bf16.mxu0 %v1017_v24  ;;  %537 = vperm.xlu0 %1058, %v63_v27  }
  0x25   :  { %1000 = vmatpush3.bf16.msra.mxu1 %v997_v35 }
  0x26   :  { %1002 = vmatprep.subr.bf16.mxu1 %v1001_v39 }
  0x27   :  { %1020 = vmatpush3.bf16.msra.mxu0 %v1017_v24 }
  0x28   :  { %1022 = vmatprep.subr.bf16.mxu0 %v1021_v28 }
  0x29   :  { %1004 = vmatpush3.bf16.msra.mxu1 %v1001_v39 }
  0x2a   :  { %1006 = vmatprep.subr.bf16.mxu1 %v1005_v41 }
  0x2b   :  { %1024 = vmatpush3.bf16.msra.mxu0 %v1021_v28 }
  0x2d   :  { %1008 = vmatpush3.bf16.msra.mxu1 %v1005_v41 }
  0x2e   :  { %972 = vmatmul.mubr.msk.f32.vlgmr.msra.gmra.mrb[2].mxu0 %vm167_vm1, %v50_v29  ;;  %1026 = vmatprep.subr.bf16.mxu1 %v1025_v44 }
  0x2f   :  { %518 = vmatprep.mubr.f32.mxu0 %v1153_v0 }
  0x96   :  { %v72_v45 = vpop.permute.xlu0 %71 }
  0x97   :  { %v260_v51 = vpop.permute.xlu1 %259 }
  0x9a   :  { %v77_v46 = vpop.permute.xlu0 %76 }
  0x9b   :  { %v265_v57 = vpop.permute.xlu1 %264 }
  0x9f   :  { %v440_v17 = vpop.permute.xlu0 %439 }
  0xa0   :  { %v445_v22 = vpop.permute.xlu1 %444 }
  0xa3   :  { %v538_v34 = vpop.permute.xlu0 %537 }
  0xf1   :  { %v935_v47 = vpop.f32.mrb[0].mxu0 }
  0xf2   :  { %v158_v48 = vadd.f32 %v935_v47, %v77_v46  ;;  %v152_v49 = vpop.f32.mrb[1].mxu0 }
  0xf3   :  { %v153_v50 = vadd.f32 %v152_v49, %v72_v45 }
  0xf4   :  { %1065 = vtanh.f32 %v158_v48 }
  0xf5   :  { %1067 = vtanh.f32 %v153_v50 }
  0xfe   :  { %v1066_v54 = vpop.eup %1065 }
  0xff   :  { %v1068_v55 = vpop.eup %1067 }
 0x100   :  { %952 = vmatprep.mubr.msk.f32.mxu1 %vm167_vm1, %v1068_v55 }
 0x101   :  { %953 = vmatmul.mubr.msk.f32.vlgmr.msra.gmra.mrb[0].mxu1 %vm167_vm1, %v1066_v54  ;;  %v973_v58 = vpop.f32.mrb[2].mxu0 }
 0x102   :  { %v345_v59 = vadd.f32 %v973_v58, %v265_v57  ;;  %v339_v60 = vpop.f32.mrb[3].mxu0  ;;  %1028 = vmatpush3.bf16.msra.mxu1 %v1025_v44 }
 0x103   :  { %v340_v61 = vadd.f32 %v339_v60, %v260_v51  ;;  %1030 = vmatprep.subr.bf16.mxu1 %v1029_v56 }
 0x105   :  { %1069 = vtanh.f32 %v340_v61 }
 0x106   :  { %1071 = vtanh.f32 %v345_v59  ;;  %1032 = vmatpush3.bf16.msra.mxu1 %v1029_v56 }
 0x10f   :  { %v1070_v62 = vpop.eup %1069 }
 0x110   :  { %v1072_v63 = vpop.eup %1071  ;;  %982 = vmatprep.mubr.msk.f32.mxu1 %vm79_vm0, %v1070_v62 }
 0x111   :  { %983 = vmatmul.mubr.msk.f32.vlgmr.msra.gmra.mrb[2].mxu1 %vm79_vm0, %v1072_v63 }
 0x112   :  { %615 = vmatprep.mubr.f32.mxu1 %v1153_v0 }
 0x1d4   :  { %v954_v2 = vpop.f32.mrb[0].mxu1 }
 0x1d5   :  { %v1321_v4 = vadd.f32 %v954_v2, %v867_v1  ;;  %v240_v5 = vpop.f32.mrb[1].mxu1 }
 0x1d6   :  { %v1325_v7 = vadd.f32 %v867_v1, %v240_v5 }
 0x1d7   :  { %v1033_v8 = vpack.c.bf16 %v1321_v4, %v1319_v3 }
 0x1d8   :  { %v1035_v9 = vpack.c.bf16 %v1325_v7, %v1323_v6 }
 0x1d9   :  { %1034 = vmatprep.subr.bf16.mxu0 %v1033_v8 }
 0x1da   :  { %1036 = vmatpush1.bf16.msra.mxu0 %v1035_v9 }
 0x1e4   :  { %v984_v11 = vpop.f32.mrb[2].mxu1 }
 0x1e5   :  { %v1334_v12 = vadd.f32 %v984_v11, %v872_v10  ;;  %v426_v13 = vpop.f32.mrb[3].mxu1 }
 0x1e6   :  { %v1336_v14 = vadd.f32 %v872_v10, %v426_v13 }
 0x1e7   :  { %458 = vmatprep.subr.mxu0 %v1334_v12 }
 0x1e8   :  { %459 = vmatpush1.msra.mxu0 %v1336_v14 }
 0x1e9   :  { %875 = vmatmul.mubr.msk.f32.vlgmr.msra.gmra.mrb[4].mxu0 %vm447_vm2, %v53_v15 }
 0x1ea   :  { %524 = vmatprep.mubr.f32.mxu0 %v1153_v0 }
 0x1ed   :  { %876 = vmatmul.mubr.msk.f32.gmra.mrb[6].mxu0 %vm447_vm2, %v54_v16 }
 0x2bc   :  { %v520_v18 = vpop.f32.mrb[4].mxu0 }
 0x2bd   :  { %v521_v19 = vadd.f32 %v520_v18, %v440_v17  ;;  %v522_v20 = vpop.f32.mrb[5].mxu0 }
 0x2be   :  { %v523_v21 = vadd.f32 %v522_v20, %v440_v17 }
 0x2bf   :  { %1073 = vtanh.f32 %v521_v19  ;;  %v690_v19 = vlaneseq }
 0x2c0   :  { %v526_v23 = vpop.f32.mrb[6].mxu0  ;;  %1075 = vtanh.f32 %v523_v21 }
 0x2c1   :  { %v527_v24 = vadd.f32 %v526_v23, %v445_v22  ;;  %v528_v25 = vpop.f32.mrb[7].mxu0 }
 0x2c2   :  { %v529_v26 = vadd.f32 %v528_v25, %v445_v22  ;;  %v691_v22 = vshrl.u32 %v690_v19, 7 }
 0x2c3   :  { %1077 = vtanh.f32 %v527_v24 }
 0x2c4   :  { %1079 = vtanh.f32 %v529_v26 }
 0x2c9   :  { %v1074_v27 = vpop.eup %1073 }
 0x2ca   :  { %v1076_v28 = vpop.eup %1075 }
 0x2cd   :  { %v1078_v29 = vpop.eup %1077 }
 0x2ce   :  { %v1080_v30 = vpop.eup %1079  ;;  %v1040_v31 = vpack.c.bf16 %v1078_v29, %v1074_v27  ;;  %v710_v29 = vsub.s32 1, %v691_v22 }
 0x2cf   :  { %v1037_v32 = vpack.c.bf16 %v1080_v30, %v1076_v28  ;;  %v692_v28 = vsub.s32 0, %v691_v22 }
 0x2d1   :  { %1039 = vmatprep.subr.msk.bf16.mxu1 %vm1038_vm5, %v1037_v32 }
 0x2d2   :  { %1042 = vmatpush1.bf16.msk.msra.mxu1 %vm1038_vm5, %v1040_v31 }
 0x2d5   :  { %879 = vmatmul.mubr.msk.f32.vlgmr.msra.gmra.mrb[4].mxu1 %vm540_vm6, %v56_v33 }
 0x2d6   :  { %837 = vmatprep.mubr.f32.mxu1 %v1153_v0 }
 0x3a8   :  { %v617_v35 = vpop.f32.mrb[4].mxu1 }
 0x3a9   :  { %v618_v36 = vadd.f32 %v617_v35, %v538_v34  ;;  %v619_v37 = vpop.f32.mrb[5].mxu1 }
 0x3aa   :  { %v620_v38 = vadd.f32 %v619_v37, %v538_v34  ;;  %v728_v34 = vsub.s32 2, %v691_v22 }
 0x3ab   :  { %v624_v39 = vrot.slane %v618_v36, 1  ;;  %v630_v42 = vrot.slane %v618_v36, 2 }
 0x3ac   :  { %v625_v40 = vrot.slane %v620_v38, 1  ;;  %v631_v44 = vrot.slane %v620_v38, 2 }
 0x3ad   :  { %v628_v41 = vmax.f32 %v618_v36, %v624_v39 }
 0x3ae   :  { %v629_v43 = vmax.f32 %v620_v38, %v625_v40 }
 0x3af   :  { %v634_v45 = vmax.f32 %v628_v41, %v630_v42 }
 0x3b0   :  { %v635_v46 = vmax.f32 %v629_v43, %v631_v44 }
 0x3b1   :  { %v636_v47 = vsub.f32 %v618_v36, %v634_v45  ;;  %v644_v48 = vrot.slane %v634_v45, 7  ;;  %v654_v49 = vrot.slane %v634_v45, 6 }
 0x3b2   :  { %v645_v50 = vrot.slane %v635_v46, 7  ;;  %v655_v51 = vrot.slane %v635_v46, 6  ;;  %v637_v55 = vsub.f32 %v620_v38, %v635_v46 }
 0x3b3   :  { %v638_v52 = vmul.f32 1.442695, %v636_v47  ;;  %v648_v53 = vsub.f32 %v618_v36, %v644_v48  ;;  %v658_v54 = vsub.f32 %v618_v36, %v654_v49 }
 0x3b4   :  { %v649_v56 = vsub.f32 %v620_v38, %v645_v50  ;;  %v659_v57 = vsub.f32 %v620_v38, %v655_v51  ;;  %v640_v62 = vmul.f32 1.442695, %v637_v55 }
 0x3b5   :  { %v650_v58 = vmul.f32 1.442695, %v648_v53  ;;  %v660_v59 = vmul.f32 1.442695, %v658_v54  ;;  %1081 = vpow2.f32 %v638_v52 }
 0x3b6   :  { %v652_v60 = vmul.f32 1.442695, %v649_v56  ;;  %v662_v61 = vmul.f32 1.442695, %v659_v57 }
 0x3b7   :  { %1083 = vpow2.f32 %v650_v58 }
 0x3b8   :  { %1085 = vpow2.f32 %v660_v59 }
 0x3b9   :  { %1087 = vpow2.f32 %v652_v60 }
 0x3ba   :  { %1089 = vpow2.f32 %v662_v61 }
 0x3bb   :  { %1091 = vpow2.f32 %v640_v62 }
 0x3bf   :  { %v1082_v63 = vpop.eup %1081 }
 0x3c1   :  { %v1084_v0 = vpop.eup %1083 }
 0x3c2   :  { %v1086_v1 = vpop.eup %1085  ;;  %v666_v2 = vrot.slane %v1084_v0, 1 }
 0x3c3   :  { %v1088_v5 = vpop.eup %1087  ;;  %v674_v11 = vrot.slane %v1086_v1, 2 }
 0x3c4   :  { %v1090_v8 = vpop.eup %1089  ;;  %v667_v9 = vrot.slane %v1088_v5, 1  ;;  %v670_v10 = vadd.f32 %v1082_v63, %v666_v2 }
 0x3c5   :  { %v1092_v13 = vpop.eup %1091  ;;  %v675_v16 = vrot.slane %v1090_v8, 2 }
 0x3c6   :  { %v671_v15 = vadd.f32 %v1092_v13, %v667_v9  ;;  %v678_v17 = vadd.f32 %v674_v11, %v670_v10 }
 0x3c8   :  { %v679_v18 = vadd.f32 %v675_v16, %v671_v15  ;;  %1093 = vrcp.f32 %v678_v17 }
 0x3ca   :  { %1095 = vrcp.f32 %v679_v18 }
 0x3d2   :  { %v1094_v20 = vpop.eup %1093 }
 0x3d3   :  { %v682_v21 = vmul.f32 %v1094_v20, %v678_v17 }
 0x3d4   :  { %v1096_v23 = vpop.eup %1095 }
 0x3d5   :  { %v683_v24 = vmul.f32 %v1096_v23, %v679_v18  ;;  %v684_v25 = vsub.f32 2.0, %v682_v21 }
 0x3d7   :  { %v685_v26 = vsub.f32 2.0, %v683_v24  ;;  %v686_v27 = vmul.f32 %v1094_v20, %v684_v25 }
 0x3d9   :  { %v687_v30 = vmul.f32 %v1096_v23, %v685_v26  ;;  %v688_v31 = vmul.f32 %v1082_v63, %v686_v27  ;;  %v702_v32 = vrot.slane %v686_v27, 7  ;;  %v720_v33 = vrot.slane %v686_v27, 6 }
 0x3db   :  { %v689_v35 = vmul.f32 %v1092_v13, %v687_v30  ;;  %v693_v36 = vrot.slane %v688_v31, %v692_v28  ;;  %v703_v37 = vrot.slane %v687_v30, 7  ;;  %v706_v38 = vmul.f32 %v1084_v0, %v702_v32 }
 0x3dc   :  { %v721_v39 = vrot.slane %v687_v30, 6  ;;  %v724_v40 = vmul.f32 %v1086_v1, %v720_v33 }
 0x3dd   :  { %v697_v41 = vrot.slane %v689_v35, %v692_v28  ;;  %v707_v42 = vmul.f32 %v1088_v5, %v703_v37  ;;  %v711_v43 = vrot.slane %v706_v38, %v710_v29  ;;  %v698_v46 = vmul.f32 %v693_v36, %v1323_v6  ;;  %v64_v6 = vld [vmem:[%s1386_s4 + $0x78] sm:$0xff]  ;;  %v55_v5 = vld [vmem:[%s1386_s4 + $0x30] sm:$0xff] }
 0x3de   :  { %v725_v44 = vmul.f32 %v1090_v8, %v721_v39  ;;  %v729_v45 = vrot.slane %v724_v40, %v728_v34 }
 0x3df   :  { %v715_v47 = vrot.slane %v707_v42, %v710_v29  ;;  %v716_v48 = vmul.f32 %v711_v43, %v1325_v7  ;;  %v699_v52 = vmul.f32 %v697_v41, %v1319_v3 }
 0x3e0   :  { %v733_v49 = vrot.slane %v725_v44, %v728_v34  ;;  %v734_v51 = vmul.f32 %v729_v45, %v1336_v14  ;;  %v739_v14 = vand.u32 127, %v690_v19 }
 0x3e1   :  { %v718_v50 = vadd.f32 %v716_v48, %v698_v46  ;;  %v717_v53 = vmul.f32 %v715_v47, %v1321_v4 }
 0x3e2   :  { %v735_v56 = vmul.f32 %v733_v49, %v1334_v12  ;;  %v740_v3 = vadd.s32 128, %v739_v14  ;;  %vm749_vm7 = vcmp.lt.s32.totalorder %v739_v14, 1  ;;  %vm890_vm9 = vcmp.ne.s32.totalorder %v739_v14, 0 }
 0x3e3   :  { %v736_v54 = vadd.f32 %v734_v51, %v718_v50  ;;  %v719_v55 = vadd.f32 %v717_v53, %v699_v52  ;;  %vm760_vm11 = vcmp.lt.s32.totalorder %v739_v14, 127  ;;  %vm1047_vm12 = vmpackc.low %vm1154_vm4, %vm890_vm9  ;;  %vm892_vm14 = vcmp.ne.s32.totalorder %v739_v14, 127 }
 0x3e4   :  { %v742_v58 = vand.u32 127, %v740_v3 }
 0x3e5   :  { %756 = vrot.lane.b32.xlu0 %v736_v54, %s1155_s9  ;;  %v737_v57 = vadd.f32 %v735_v56, %v719_v55 }
 0x3e6   :  { %vm889_vm8 = vcmp.ne.s32.totalorder %v742_v58, 0  ;;  %vm891_vm13 = vcmp.ne.s32.totalorder %v742_v58, 127 }
 0x3e7   :  { %v1060_v7 = vpack.i.bf16 %v737_v57, %v736_v54  ;;  %vm1044_vm10 = vmpackc.low %vm1154_vm4, %vm889_vm8 }
 0x3e9   :  { %1061 = vrot.lane.b32.xlu1 %v1060_v7, %s1156_s12  ;;  %767 = vperm.xlu0 %1058, %v64_v6  }
 0x3ed   :  { %758 = vrot.lane.b32.xlu1 %v737_v57, %s1155_s9 }
 0x457   :  { %v757_v1 = vpop.permute.xlu0 %756 }
 0x45b   :  { %v1062_v4 = vpop.permute.xlu1 %1061 }
 0x45c   :  { %v1064_v59 = vunpack.i.h.bf16 %v1062_v4  ;;  %v1063_v12 = vunpack.i.l.bf16 %v1062_v4 }
 0x45e   :  { %v750_v60 = vsel %vm749_vm7, %v1063_v12, %v1064_v59  ;;  %v751_v61 = vsel %vm749_vm7, %v1064_v59, %v1063_v12 }
 0x45f   :  { %v1043_v62 = vpack.c.bf16 %v737_v57, %v750_v60  ;;  %v1046_v63 = vpack.c.bf16 %v736_v54, %v751_v61  ;;  %v759_v0 = vpop.permute.xlu1 %758 }
 0x460   :  { %v762_v2 = vsel %vm760_vm11, %v759_v0, %v757_v1  ;;  %v761_v8 = vsel %vm760_vm11, %v757_v1, %v759_v0 }
 0x461   :  { %1045 = vmatprep.subr.msk.bf16.mxu1 %vm1044_vm10, %v1043_v62 }
 0x462   :  { %1048 = vmatpush1.bf16.msk.msra.mxu1 %vm1047_vm12, %v1046_v63 }
 0x463   :  { %885 = vmatprep.subr.msk.mxu1 %vm891_vm13, %v762_v2 }
 0x466   :  { %887 = vmatpush1.msk.msra.mxu1 %vm892_vm14, %v761_v8 }
 0x467   :  { %888 = vmatmul.mubr.msk.f32.vlgmr.msra.gmra.mrb[6].mxu1 %vm447_vm2, %v55_v5 }
 0x468   :  { %v768_v9 = vpop.permute.xlu0 %767 }
 0x53a   :  { %v839_v10 = vpop.f32.mrb[6].mxu1 }
 0x53b   :  { %v840_v11 = vadd.f32 %v839_v10, %v768_v9  ;;  %v841_v13 = vpop.f32.mrb[7].mxu1 }
 0x53c   :  { %v842_v15 = vadd.f32 %v841_v13, %v768_v9 }
 0x53d   :  { %1097 = vtanh.f32 %v840_v11 }
 0x53e   :  { %1099 = vtanh.f32 %v842_v15 }
 0x547   :  { %v1098_v16 = vpop.eup %1097 }
 0x548   :  { %v1100_v17 = vpop.eup %1099  ;;  %846 = vst [vmem:[#allocation5] sm:$0xff] %v1098_v16 }
 0x549   :  { %847 = vst [vmem:[#allocation5 + $0x8] sm:$0xff] %v1100_v17 }
 0x54a   :  { %1134 = shalt.err (!%p1131_p12)
}
 0x54b   :  { %s1135_s18 = scalar_lea.hbm %s1387_s5, 256 }
 0x54c   :  { %p1136_p13 = scmp.ne.s32.totalorder %s1387_s5, %s1135_s18  ;;  %p1139_p0 = scmp.lt.u32.totalorder %s1135_s18, %s1387_s5 }
 0x54e   :  { %p1141_p1 = pnand %p1139_p0, %p1136_p13 }
 0x550   :  { %1144 = shalt.err (!%p1141_p1)
}
 0x551   :  { %859 = dma.vmem_to_hbm [thread:$0]  %s854_s15, 256, %s1387_s5, [#allocation4], %s1150_s28, %s1150_s28, %s1151_s29  }
 0x552   :  { %1147 = dma.done.wait [#allocation4], 256  }
 0x553   :  { %1148 = vsyncadd [#allocation4], 4294967040 }
 0x554   :  { %863 = vsyncpa [#allocation3], 1 }
 0x555   :  { %864 = vsyncpa [#allocation4], 1 }

</bundles_post_ra>
